<compile_context>
chip_gen: v5e
topology: v5e:2x2
jax: 0.10.0
libtpu: 0.0.40
codegen_flags: <defaults>
</compile_context>

<pallas_src>
import math

import jax
import jax.numpy as jnp
from jax import lax
from jax.experimental import pallas as pl
from jax.experimental.pallas import tpu as pltpu


def _make_mha_kernel(num_heads, dim_head):
    """Kernel factory closing over static head geometry."""

    def kernel(x_ref, y_ref,
               wq_ref, bq_ref, wk_ref, bk_ref, wv_ref, bv_ref,
               wo_ref, bo_ref,
               o_ref,
               k_scr, v_scr, attn_scr):
        mm_dtype = x_ref.dtype            # native MXU dtype (bf16 stays bf16)

        # ---- K/V projections: once per batch. The query-block axis is marked
        # "arbitrary" so it runs in order on one core; q_block == 0 therefore
        # always executes first for each batch and fills the persistent cache.
        @pl.when(pl.program_id(1) == 0)
        def _():
            y = y_ref[...]                                            # (Sy, D)
            k_scr[...] = (jnp.dot(y, wk_ref[...],
                                  preferred_element_type=jnp.float32)
                          + bk_ref[...]).astype(k_scr.dtype)
            v_scr[...] = (jnp.dot(y, wv_ref[...],
                                  preferred_element_type=jnp.float32)
                          + bv_ref[...]).astype(v_scr.dtype)

        # ---- Full-width query projection (1/sqrt(dh) already folded in).
        q = (jnp.dot(x_ref[...], wq_ref[...],
                     preferred_element_type=jnp.float32)
             + bq_ref[...]).astype(mm_dtype)                          # (TQ, D)
        k = k_scr[...]                                                # (Sy, D)
        v = v_scr[...]                                                # (Sy, D)

        # ---- Per-head attention; results packed head-major into (TQ, D).
        for h in range(num_heads):
            sl = slice(h * dim_head, (h + 1) * dim_head)
            # scores = q_h @ k_h^T expressed as a contraction on dim_head, so
            # no transposed copy of k is ever materialized.
            scores = lax.dot_general(
                q[:, sl], k[:, sl],
                dimension_numbers=(((1,), (1,)), ((), ())),
                preferred_element_type=jnp.float32)                   # (TQ, Sy)
            # TODO(synk): attention-mask support omitted (module's mask=None path).
            scores = scores - jnp.max(scores, axis=-1, keepdims=True)
            e = jnp.exp(scores)
            p = e * pl.reciprocal(jnp.sum(e, axis=-1, keepdims=True), approx=True)
            attn_h = jnp.dot(p.astype(mm_dtype), v[:, sl],
                             preferred_element_type=jnp.float32)      # (TQ, dh)
            attn_scr[:, sl] = attn_h.astype(attn_scr.dtype)

        # ---- Single full-depth output projection + bias (dropout = identity).
        o_ref[...] = (jnp.dot(attn_scr[...], wo_ref[...],
                              preferred_element_type=jnp.float32)
                      + bo_ref[...]).astype(o_ref.dtype)

    return kernel


def _vmem_estimate(tq, sy, d, item):
    """Rough per-core VMEM working set for a given query tile (bytes)."""
    y_buf = 2 * sy * d * item               # y block (double-buffered)
    kv_scr = 2 * sy * d * item              # K / V caches (single copies)
    weights = 2 * 4 * d * d * item          # 4 projection slabs, double-buffered
    xo_buf = 2 * 2 * tq * d * item          # x tile + out tile, double-buffered
    attn = tq * d * item                    # attn slab
    temps = tq * d * 4 + 2 * tq * sy * 4    # f32 q + scores/exp temporaries
    return y_buf + kv_scr + weights + xo_buf + attn + temps


def _pick_q_tile(s, sy, d, item):
    """VMEM-aware query tile: largest of {512,256,128} fitting the budget."""
    if s <= 128:
        return s                            # block == full dim, always legal
    budget = 24 << 20                       # stay inside the 32 MiB scoped default
    for t in (512, 256, 128):
        if t <= s and _vmem_estimate(t, sy, d, item) <= budget:
            return t
    return 128


def multi_head_attention(x, y, params, *, num_heads):
    """x: (B, S, D) queries, y: (B, Sy, D) keys/values. Returns (B, S, D)."""
    B, S, D = x.shape
    By, Sy, Dy = y.shape
    assert B == By and D == Dy and D % num_heads == 0
    H = num_heads
    dh = D // H
    mm_dtype = x.dtype
    item = jnp.dtype(mm_dtype).itemsize

    wq, bq, wk, bk, wv, bv, wo, bo = params

    # One-time wrapper-side reorganisation (plain XLA ops, outside the kernel):
    #  * transpose to "x @ W" layout (PyTorch stores W as (out, in)),
    #  * fold the 1/sqrt(dh) attention scale into the query projection (fold in
    #    f32, then cast back so bf16 params do not double-round),
    #  * keep biases in f32 (they add into f32 accumulators).
    inv_sqrt_dh = 1.0 / math.sqrt(dh)
    f32 = jnp.float32
    wq_t = (wq.astype(f32).T * inv_sqrt_dh).astype(wq.dtype)   # (D, D)
    wk_t = wk.T                                                # (D, D)
    wv_t = wv.T                                                # (D, D)
    wo_t = wo.T                                                # (D, D)
    bq_2 = (bq.astype(f32) * inv_sqrt_dh).reshape(1, D)
    bk_2 = bk.astype(f32).reshape(1, D)
    bv_2 = bv.astype(f32).reshape(1, D)
    bo_2 = bo.astype(f32).reshape(1, D)

    TQ = _pick_q_tile(S, Sy, D, item)
    nq = pl.cdiv(S, TQ)                   # ragged tail handled by masked writes

    # TODO(synk): for very long Sy (v7x's 64 MiB VMEM especially), add a KV grid
    # axis with flash-style online-softmax accumulation instead of keeping the
    # full (Sy, D) K/V cache and (TQ, Sy) f32 scores resident.

    est = _vmem_estimate(TQ, Sy, D, item)
    vmem_limit = None
    if est > (30 << 20):                  # only raise above the scoped default
        vmem_limit = min(int(est * 1.2), 128 << 20)

    x_spec = pl.BlockSpec((None, TQ, D), lambda b, i: (b, i, 0))
    y_spec = pl.BlockSpec((None, Sy, D), lambda b, i: (b, 0, 0))
    w_spec = pl.BlockSpec((D, D), lambda b, i: (0, 0))    # constant index -> resident
    b_spec = pl.BlockSpec((1, D), lambda b, i: (0, 0))
    out_spec = pl.BlockSpec((None, TQ, D), lambda b, i: (b, i, 0))

    return pl.pallas_call(
        _make_mha_kernel(H, dh),
        out_shape=jax.ShapeDtypeStruct((B, S, D), x.dtype),
        grid_spec=pltpu.PrefetchScalarGridSpec(
            num_scalar_prefetch=0,
            grid=(B, nq),
            in_specs=[x_spec, y_spec,
                      w_spec, b_spec,      # Wq, bq
                      w_spec, b_spec,      # Wk, bk
                      w_spec, b_spec,      # Wv, bv
                      w_spec, b_spec],     # Wo, bo
            out_specs=out_spec,
            scratch_shapes=[
                pltpu.VMEM((Sy, D), mm_dtype),   # K cache (all heads)
                pltpu.VMEM((Sy, D), mm_dtype),   # V cache (all heads)
                pltpu.VMEM((TQ, D), mm_dtype),   # packed per-head attn slab
            ],
        ),
        compiler_params=pltpu.CompilerParams(
            # batch shards across TensorCores; the query-block axis must run in
            # order on one core so the pl.when(i == 0) K/V cache fill is valid.
            dimension_semantics=("parallel", "arbitrary"),
            vmem_limit_bytes=vmem_limit),
    )(x, y, wq_t, bq_2, wk_t, bk_2, wv_t, bv_2, wo_t, bo_2)


def _reference_mha(x, y, params, *, num_heads):
    """Pure-JAX reference mirroring the PyTorch forward (eval mode)."""
    wq, bq, wk, bk, wv, bv, wo, bo = params
    B, S, D = x.shape
    dh = D // num_heads

    def proj(inp, w, b):
        return inp @ w.T + b

    q = proj(x, wq, bq).reshape(B, -1, num_heads, dh).transpose(0, 2, 1, 3)
    k = proj(y, wk, bk).reshape(B, -1, num_heads, dh).transpose(0, 2, 1, 3)
    v = proj(y, wv, bv).reshape(B, -1, num_heads, dh).transpose(0, 2, 1, 3)

    scores = jnp.einsum("bhqd,bhkd->bhqk", q, k) / math.sqrt(dh)
    weight = jax.nn.softmax(scores, axis=-1)
    attn = jnp.einsum("bhqk,bhkd->bhqd", weight, v)
    attn = attn.transpose(0, 2, 1, 3).reshape(B, S, D)
    return attn @ wo.T + bo


if __name__ == "__main__":
    B, S, Sy = 2, 8, 8
    num_heads, d_model = 4, 32

    key = jax.random.PRNGKey(0)
    keys = jax.random.split(key, 10)

    x = jax.random.normal(keys[0], (B, S, d_model), dtype=jnp.float32)
    y = jax.random.normal(keys[1], (B, Sy, d_model), dtype=jnp.float32)

    # PyTorch Linear-style parameter shapes: (out, in) weights + (out,) biases.
    scale = 1.0 / math.sqrt(d_model)
    wq = jax.random.uniform(keys[2], (d_model, d_model), jnp.float32, -scale, scale)
    bq = jax.random.uniform(keys[3], (d_model,), jnp.float32, -scale, scale)
    wk = jax.random.uniform(keys[4], (d_model, d_model), jnp.float32, -scale, scale)
    bk = jax.random.uniform(keys[5], (d_model,), jnp.float32, -scale, scale)
    wv = jax.random.uniform(keys[6], (d_model, d_model), jnp.float32, -scale, scale)
    bv = jax.random.uniform(keys[7], (d_model,), jnp.float32, -scale, scale)
    wo = jax.random.uniform(keys[8], (d_model, d_model), jnp.float32, -scale, scale)
    bo = jax.random.uniform(keys[9], (d_model,), jnp.float32, -scale, scale)
    params = (wq, bq, wk, bk, wv, bv, wo, bo)

    out = multi_head_attention(x, y, params, num_heads=num_heads)
    out = jax.block_until_ready(out)

    ref = _reference_mha(x, y, params, num_heads=num_heads)
    assert out.shape == (B, S, d_model)
    max_err = jnp.max(jnp.abs(out - ref))
    # approx-reciprocal softmax -> slightly looser tolerance than exact f32.
    assert jnp.allclose(out, ref, atol=2e-3, rtol=2e-3), (
        f"mismatch vs reference (max abs err {max_err})")

    print("KERNEL_OK")
</pallas_src>

<mosaic_0001>
module attributes {stable_mosaic.version = 11 : i64} {
  func.func @kernel(%arg0: i32, %arg1: i32, %arg2: memref<1x8x32xf32, #tpu.memory_space<vmem>>, %arg3: memref<1x8x32xf32, #tpu.memory_space<vmem>>, %arg4: memref<32x32xf32, #tpu.memory_space<vmem>>, %arg5: memref<1x32xf32, #tpu.memory_space<vmem>>, %arg6: memref<32x32xf32, #tpu.memory_space<vmem>>, %arg7: memref<1x32xf32, #tpu.memory_space<vmem>>, %arg8: memref<32x32xf32, #tpu.memory_space<vmem>>, %arg9: memref<1x32xf32, #tpu.memory_space<vmem>>, %arg10: memref<32x32xf32, #tpu.memory_space<vmem>>, %arg11: memref<1x32xf32, #tpu.memory_space<vmem>>, %arg12: memref<1x8x32xf32, #tpu.memory_space<vmem>>, %arg13: memref<8x32xf32, #tpu.memory_space<vmem>>, %arg14: memref<8x32xf32, #tpu.memory_space<vmem>>, %arg15: memref<8x32xf32, #tpu.memory_space<vmem>>) attributes {dimension_semantics = [#tpu.dimension_semantics<parallel>, #tpu.dimension_semantics<arbitrary>], iteration_bounds = array<i64: 2, 1>, scalar_prefetch = 0 : i64, scratch_operands = 3 : i64, tpu.core_type = #tpu.core_type<tc>, window_params = [{transform_indices = @transform_0, window_bounds = array<i64: 1, 8, 32>}, {transform_indices = @transform_1, window_bounds = array<i64: 1, 8, 32>}, {pipeline_mode = #tpu.pipeline_mode<synchronous>, transform_indices = @transform_2, window_bounds = array<i64: 32, 32>}, {pipeline_mode = #tpu.pipeline_mode<synchronous>, transform_indices = @transform_3, window_bounds = array<i64: 1, 32>}, {pipeline_mode = #tpu.pipeline_mode<synchronous>, transform_indices = @transform_4, window_bounds = array<i64: 32, 32>}, {pipeline_mode = #tpu.pipeline_mode<synchronous>, transform_indices = @transform_5, window_bounds = array<i64: 1, 32>}, {pipeline_mode = #tpu.pipeline_mode<synchronous>, transform_indices = @transform_6, window_bounds = array<i64: 32, 32>}, {pipeline_mode = #tpu.pipeline_mode<synchronous>, transform_indices = @transform_7, window_bounds = array<i64: 1, 32>}, {pipeline_mode = #tpu.pipeline_mode<synchronous>, transform_indices = @transform_8, window_bounds = array<i64: 32, 32>}, {pipeline_mode = #tpu.pipeline_mode<synchronous>, transform_indices = @transform_9, window_bounds = array<i64: 1, 32>}, {transform_indices = @transform_10, window_bounds = array<i64: 1, 8, 32>}]} {
    %c0_i32 = arith.constant 0 : i32
    %0 = arith.cmpi eq, %arg1, %c0_i32 : i32
    %1 = arith.extui %0 : i1 to i32
    %c0_i32_0 = arith.constant 0 : i32
    %2 = arith.cmpi ne, %1, %c0_i32_0 : i32
    scf.if %2 {
      %c0_42 = arith.constant 0 : index
      %c0_43 = arith.constant 0 : index
      %c0_44 = arith.constant 0 : index
      %85 = vector.load %arg3[%c0_42, %c0_43, %c0_44] : memref<1x8x32xf32, #tpu.memory_space<vmem>>, vector<1x8x32xf32>
      %86 = vector.shape_cast %85 : vector<1x8x32xf32> to vector<8x32xf32>
      %c0_45 = arith.constant 0 : index
      %c0_46 = arith.constant 0 : index
      %87 = vector.load %arg6[%c0_45, %c0_46] : memref<32x32xf32, #tpu.memory_space<vmem>>, vector<32x32xf32>
      %cst_47 = arith.constant dense<0.000000e+00> : vector<8x32xf32>
      %88 = tpu.matmul %86, %87, %cst_47 {dimension_numbers = #tpu.dot_dimension_numbers<[1], [0], [0], [1], [0, 0, 1, 1], [], []>} : vector<8x32xf32>, vector<32x32xf32>, vector<8x32xf32> -> vector<8x32xf32>
      %c0_48 = arith.constant 0 : index
      %c0_49 = arith.constant 0 : index
      %89 = vector.load %arg7[%c0_48, %c0_49] : memref<1x32xf32, #tpu.memory_space<vmem>>, vector<1x32xf32>
      %90 = vector.broadcast %89 : vector<1x32xf32> to vector<8x32xf32>
      %91 = arith.addf %88, %90 : vector<8x32xf32>
      %c0_50 = arith.constant 0 : index
      %c0_51 = arith.constant 0 : index
      %92 = vector.load %arg13[%c0_50, %c0_51] : memref<8x32xf32, #tpu.memory_space<vmem>>, vector<8x32xf32>
      tpu.vector_store %arg13[%c0_50, %c0_51], %91 {strides = array<i32>} : memref<8x32xf32, #tpu.memory_space<vmem>>, vector<8x32xf32>,
      %c0_52 = arith.constant 0 : index
      %c0_53 = arith.constant 0 : index
      %93 = vector.load %arg8[%c0_52, %c0_53] : memref<32x32xf32, #tpu.memory_space<vmem>>, vector<32x32xf32>
      %cst_54 = arith.constant dense<0.000000e+00> : vector<8x32xf32>
      %94 = tpu.matmul %86, %93, %cst_54 {dimension_numbers = #tpu.dot_dimension_numbers<[1], [0], [0], [1], [0, 0, 1, 1], [], []>} : vector<8x32xf32>, vector<32x32xf32>, vector<8x32xf32> -> vector<8x32xf32>
      %c0_55 = arith.constant 0 : index
      %c0_56 = arith.constant 0 : index
      %95 = vector.load %arg9[%c0_55, %c0_56] : memref<1x32xf32, #tpu.memory_space<vmem>>, vector<1x32xf32>
      %96 = vector.broadcast %95 : vector<1x32xf32> to vector<8x32xf32>
      %97 = arith.addf %94, %96 : vector<8x32xf32>
      %c0_57 = arith.constant 0 : index
      %c0_58 = arith.constant 0 : index
      %98 = vector.load %arg14[%c0_57, %c0_58] : memref<8x32xf32, #tpu.memory_space<vmem>>, vector<8x32xf32>
      tpu.vector_store %arg14[%c0_57, %c0_58], %97 {strides = array<i32>} : memref<8x32xf32, #tpu.memory_space<vmem>>, vector<8x32xf32>,
    } else {
    }
    %c0 = arith.constant 0 : index
    %c0_1 = arith.constant 0 : index
    %c0_2 = arith.constant 0 : index
    %3 = vector.load %arg2[%c0, %c0_1, %c0_2] : memref<1x8x32xf32, #tpu.memory_space<vmem>>, vector<1x8x32xf32>
    %4 = vector.shape_cast %3 : vector<1x8x32xf32> to vector<8x32xf32>
    %c0_3 = arith.constant 0 : index
    %c0_4 = arith.constant 0 : index
    %5 = vector.load %arg4[%c0_3, %c0_4] : memref<32x32xf32, #tpu.memory_space<vmem>>, vector<32x32xf32>
    %cst = arith.constant dense<0.000000e+00> : vector<8x32xf32>
    %6 = tpu.matmul %4, %5, %cst {dimension_numbers = #tpu.dot_dimension_numbers<[1], [0], [0], [1], [0, 0, 1, 1], [], []>} : vector<8x32xf32>, vector<32x32xf32>, vector<8x32xf32> -> vector<8x32xf32>
    %c0_5 = arith.constant 0 : index
    %c0_6 = arith.constant 0 : index
    %7 = vector.load %arg5[%c0_5, %c0_6] : memref<1x32xf32, #tpu.memory_space<vmem>>, vector<1x32xf32>
    %8 = vector.broadcast %7 : vector<1x32xf32> to vector<8x32xf32>
    %9 = arith.addf %6, %8 : vector<8x32xf32>
    %c0_7 = arith.constant 0 : index
    %c0_8 = arith.constant 0 : index
    %10 = vector.load %arg13[%c0_7, %c0_8] : memref<8x32xf32, #tpu.memory_space<vmem>>, vector<8x32xf32>
    %c0_9 = arith.constant 0 : index
    %c0_10 = arith.constant 0 : index
    %11 = vector.load %arg14[%c0_9, %c0_10] : memref<8x32xf32, #tpu.memory_space<vmem>>, vector<8x32xf32>
    %12 = vector.extract_strided_slice %9 {offsets = [0, 0], sizes = [8, 8], strides = [1, 1]} : vector<8x32xf32> to vector<8x8xf32>
    %13 = vector.extract_strided_slice %10 {offsets = [0, 0], sizes = [8, 8], strides = [1, 1]} : vector<8x32xf32> to vector<8x8xf32>
    %cst_11 = arith.constant dense<0.000000e+00> : vector<8x8xf32>
    %14 = tpu.matmul %12, %13, %cst_11 {dimension_numbers = #tpu.dot_dimension_numbers<[1], [1], [0], [0], [0, 0, 1, 0], [], []>} : vector<8x8xf32>, vector<8x8xf32>, vector<8x8xf32> -> vector<8x8xf32>
    %cst_12 = arith.constant dense<0xFF800000> : vector<8xf32>
    %15 = vector.multi_reduction <maximumf>, %14, %cst_12 [1] : vector<8x8xf32> to vector<8xf32>
    %16 = vector.shape_cast %15 : vector<8xf32> to vector<8x1xf32>
    %17 = vector.broadcast %16 : vector<8x1xf32> to vector<8x8xf32>
    %18 = arith.subf %14, %17 : vector<8x8xf32>
    %19 = math.exp %18 : vector<8x8xf32>
    %cst_13 = arith.constant dense<0.000000e+00> : vector<8xf32>
    %20 = vector.multi_reduction <add>, %19, %cst_13 [1] : vector<8x8xf32> to vector<8xf32>
    %21 = vector.shape_cast %20 : vector<8xf32> to vector<8x1xf32>
    %22 = tpu.reciprocal %21 {approx = true} : vector<8x1xf32> -> vector<8x1xf32>
    %23 = vector.broadcast %22 : vector<8x1xf32> to vector<8x8xf32>
    %24 = arith.mulf %19, %23 : vector<8x8xf32>
    %25 = vector.extract_strided_slice %11 {offsets = [0, 0], sizes = [8, 8], strides = [1, 1]} : vector<8x32xf32> to vector<8x8xf32>
    %cst_14 = arith.constant dense<0.000000e+00> : vector<8x8xf32>
    %26 = tpu.matmul %24, %25, %cst_14 {dimension_numbers = #tpu.dot_dimension_numbers<[1], [0], [0], [1], [0, 0, 1, 1], [], []>} : vector<8x8xf32>, vector<8x8xf32>, vector<8x8xf32> -> vector<8x8xf32>
    %c0_15 = arith.constant 0 : index
    %c0_16 = arith.constant 0 : index
    %27 = vector.load %arg15[%c0_15, %c0_16] : memref<8x32xf32, #tpu.memory_space<vmem>>, vector<8x8xf32>
    tpu.vector_store %arg15[%c0_15, %c0_16], %26 {strides = array<i32>} : memref<8x32xf32, #tpu.memory_space<vmem>>, vector<8x8xf32>,
    %28 = vector.extract_strided_slice %9 {offsets = [0, 8], sizes = [8, 8], strides = [1, 1]} : vector<8x32xf32> to vector<8x8xf32>
    %29 = vector.extract_strided_slice %10 {offsets = [0, 8], sizes = [8, 8], strides = [1, 1]} : vector<8x32xf32> to vector<8x8xf32>
    %cst_17 = arith.constant dense<0.000000e+00> : vector<8x8xf32>
    %30 = tpu.matmul %28, %29, %cst_17 {dimension_numbers = #tpu.dot_dimension_numbers<[1], [1], [0], [0], [0, 0, 1, 0], [], []>} : vector<8x8xf32>, vector<8x8xf32>, vector<8x8xf32> -> vector<8x8xf32>
    %cst_18 = arith.constant dense<0xFF800000> : vector<8xf32>
    %31 = vector.multi_reduction <maximumf>, %30, %cst_18 [1] : vector<8x8xf32> to vector<8xf32>
    %32 = vector.shape_cast %31 : vector<8xf32> to vector<8x1xf32>
    %33 = vector.broadcast %32 : vector<8x1xf32> to vector<8x8xf32>
    %34 = arith.subf %30, %33 : vector<8x8xf32>
    %35 = math.exp %34 : vector<8x8xf32>
    %cst_19 = arith.constant dense<0.000000e+00> : vector<8xf32>
    %36 = vector.multi_reduction <add>, %35, %cst_19 [1] : vector<8x8xf32> to vector<8xf32>
    %37 = vector.shape_cast %36 : vector<8xf32> to vector<8x1xf32>
    %38 = tpu.reciprocal %37 {approx = true} : vector<8x1xf32> -> vector<8x1xf32>
    %39 = vector.broadcast %38 : vector<8x1xf32> to vector<8x8xf32>
    %40 = arith.mulf %35, %39 : vector<8x8xf32>
    %41 = vector.extract_strided_slice %11 {offsets = [0, 8], sizes = [8, 8], strides = [1, 1]} : vector<8x32xf32> to vector<8x8xf32>
    %cst_20 = arith.constant dense<0.000000e+00> : vector<8x8xf32>
    %42 = tpu.matmul %40, %41, %cst_20 {dimension_numbers = #tpu.dot_dimension_numbers<[1], [0], [0], [1], [0, 0, 1, 1], [], []>} : vector<8x8xf32>, vector<8x8xf32>, vector<8x8xf32> -> vector<8x8xf32>
    %c0_21 = arith.constant 0 : index
    %c8 = arith.constant 8 : index
    %43 = vector.load %arg15[%c0_21, %c8] : memref<8x32xf32, #tpu.memory_space<vmem>>, vector<8x8xf32>
    tpu.vector_store %arg15[%c0_21, %c8], %42 {strides = array<i32>} : memref<8x32xf32, #tpu.memory_space<vmem>>, vector<8x8xf32>,
    %44 = vector.extract_strided_slice %9 {offsets = [0, 16], sizes = [8, 8], strides = [1, 1]} : vector<8x32xf32> to vector<8x8xf32>
    %45 = vector.extract_strided_slice %10 {offsets = [0, 16], sizes = [8, 8], strides = [1, 1]} : vector<8x32xf32> to vector<8x8xf32>
    %cst_22 = arith.constant dense<0.000000e+00> : vector<8x8xf32>
    %46 = tpu.matmul %44, %45, %cst_22 {dimension_numbers = #tpu.dot_dimension_numbers<[1], [1], [0], [0], [0, 0, 1, 0], [], []>} : vector<8x8xf32>, vector<8x8xf32>, vector<8x8xf32> -> vector<8x8xf32>
    %cst_23 = arith.constant dense<0xFF800000> : vector<8xf32>
    %47 = vector.multi_reduction <maximumf>, %46, %cst_23 [1] : vector<8x8xf32> to vector<8xf32>
    %48 = vector.shape_cast %47 : vector<8xf32> to vector<8x1xf32>
    %49 = vector.broadcast %48 : vector<8x1xf32> to vector<8x8xf32>
    %50 = arith.subf %46, %49 : vector<8x8xf32>
    %51 = math.exp %50 : vector<8x8xf32>
    %cst_24 = arith.constant dense<0.000000e+00> : vector<8xf32>
    %52 = vector.multi_reduction <add>, %51, %cst_24 [1] : vector<8x8xf32> to vector<8xf32>
    %53 = vector.shape_cast %52 : vector<8xf32> to vector<8x1xf32>
    %54 = tpu.reciprocal %53 {approx = true} : vector<8x1xf32> -> vector<8x1xf32>
    %55 = vector.broadcast %54 : vector<8x1xf32> to vector<8x8xf32>
    %56 = arith.mulf %51, %55 : vector<8x8xf32>
    %57 = vector.extract_strided_slice %11 {offsets = [0, 16], sizes = [8, 8], strides = [1, 1]} : vector<8x32xf32> to vector<8x8xf32>
    %cst_25 = arith.constant dense<0.000000e+00> : vector<8x8xf32>
    %58 = tpu.matmul %56, %57, %cst_25 {dimension_numbers = #tpu.dot_dimension_numbers<[1], [0], [0], [1], [0, 0, 1, 1], [], []>} : vector<8x8xf32>, vector<8x8xf32>, vector<8x8xf32> -> vector<8x8xf32>
    %c0_26 = arith.constant 0 : index
    %c16 = arith.constant 16 : index
    %59 = vector.load %arg15[%c0_26, %c16] : memref<8x32xf32, #tpu.memory_space<vmem>>, vector<8x8xf32>
    tpu.vector_store %arg15[%c0_26, %c16], %58 {strides = array<i32>} : memref<8x32xf32, #tpu.memory_space<vmem>>, vector<8x8xf32>,
    %60 = vector.extract_strided_slice %9 {offsets = [0, 24], sizes = [8, 8], strides = [1, 1]} : vector<8x32xf32> to vector<8x8xf32>
    %61 = vector.extract_strided_slice %10 {offsets = [0, 24], sizes = [8, 8], strides = [1, 1]} : vector<8x32xf32> to vector<8x8xf32>
    %cst_27 = arith.constant dense<0.000000e+00> : vector<8x8xf32>
    %62 = tpu.matmul %60, %61, %cst_27 {dimension_numbers = #tpu.dot_dimension_numbers<[1], [1], [0], [0], [0, 0, 1, 0], [], []>} : vector<8x8xf32>, vector<8x8xf32>, vector<8x8xf32> -> vector<8x8xf32>
    %cst_28 = arith.constant dense<0xFF800000> : vector<8xf32>
    %63 = vector.multi_reduction <maximumf>, %62, %cst_28 [1] : vector<8x8xf32> to vector<8xf32>
    %64 = vector.shape_cast %63 : vector<8xf32> to vector<8x1xf32>
    %65 = vector.broadcast %64 : vector<8x1xf32> to vector<8x8xf32>
    %66 = arith.subf %62, %65 : vector<8x8xf32>
    %67 = math.exp %66 : vector<8x8xf32>
    %cst_29 = arith.constant dense<0.000000e+00> : vector<8xf32>
    %68 = vector.multi_reduction <add>, %67, %cst_29 [1] : vector<8x8xf32> to vector<8xf32>
    %69 = vector.shape_cast %68 : vector<8xf32> to vector<8x1xf32>
    %70 = tpu.reciprocal %69 {approx = true} : vector<8x1xf32> -> vector<8x1xf32>
    %71 = vector.broadcast %70 : vector<8x1xf32> to vector<8x8xf32>
    %72 = arith.mulf %67, %71 : vector<8x8xf32>
    %73 = vector.extract_strided_slice %11 {offsets = [0, 24], sizes = [8, 8], strides = [1, 1]} : vector<8x32xf32> to vector<8x8xf32>
    %cst_30 = arith.constant dense<0.000000e+00> : vector<8x8xf32>
    %74 = tpu.matmul %72, %73, %cst_30 {dimension_numbers = #tpu.dot_dimension_numbers<[1], [0], [0], [1], [0, 0, 1, 1], [], []>} : vector<8x8xf32>, vector<8x8xf32>, vector<8x8xf32> -> vector<8x8xf32>
    %c0_31 = arith.constant 0 : index
    %c24 = arith.constant 24 : index
    %75 = vector.load %arg15[%c0_31, %c24] : memref<8x32xf32, #tpu.memory_space<vmem>>, vector<8x8xf32>
    tpu.vector_store %arg15[%c0_31, %c24], %74 {strides = array<i32>} : memref<8x32xf32, #tpu.memory_space<vmem>>, vector<8x8xf32>,
    %c0_32 = arith.constant 0 : index
    %c0_33 = arith.constant 0 : index
    %76 = vector.load %arg15[%c0_32, %c0_33] : memref<8x32xf32, #tpu.memory_space<vmem>>, vector<8x32xf32>
    %c0_34 = arith.constant 0 : index
    %c0_35 = arith.constant 0 : index
    %77 = vector.load %arg10[%c0_34, %c0_35] : memref<32x32xf32, #tpu.memory_space<vmem>>, vector<32x32xf32>
    %cst_36 = arith.constant dense<0.000000e+00> : vector<8x32xf32>
    %78 = tpu.matmul %76, %77, %cst_36 {dimension_numbers = #tpu.dot_dimension_numbers<[1], [0], [0], [1], [0, 0, 1, 1], [], []>} : vector<8x32xf32>, vector<32x32xf32>, vector<8x32xf32> -> vector<8x32xf32>
    %c0_37 = arith.constant 0 : index
    %c0_38 = arith.constant 0 : index
    %79 = vector.load %arg11[%c0_37, %c0_38] : memref<1x32xf32, #tpu.memory_space<vmem>>, vector<1x32xf32>
    %80 = vector.broadcast %79 : vector<1x32xf32> to vector<8x32xf32>
    %81 = arith.addf %78, %80 : vector<8x32xf32>
    %c0_39 = arith.constant 0 : index
    %c0_40 = arith.constant 0 : index
    %c0_41 = arith.constant 0 : index
    %82 = vector.load %arg12[%c0_39, %c0_40, %c0_41] : memref<1x8x32xf32, #tpu.memory_space<vmem>>, vector<1x8x32xf32>
    %83 = vector.shape_cast %82 : vector<1x8x32xf32> to vector<8x32xf32>
    %84 = vector.shape_cast %81 : vector<8x32xf32> to vector<1x8x32xf32>
    tpu.vector_store %arg12[%c0_39, %c0_40, %c0_41], %84 {strides = array<i32>} : memref<1x8x32xf32, #tpu.memory_space<vmem>>, vector<1x8x32xf32>,
    return
  }
  func.func @transform_0(%arg0: i32, %arg1: i32) -> (i32, i32, i32) {
    %c0_i32 = arith.constant 0 : i32
    %c0_i32_0 = arith.constant 0 : i32
    return %arg0, %arg1, %c0_i32 : i32, i32, i32
  }
  func.func @transform_1(%arg0: i32, %arg1: i32) -> (i32, i32, i32) {
    %c0_i32 = arith.constant 0 : i32
    %c0_i32_0 = arith.constant 0 : i32
    %c0_i32_1 = arith.constant 0 : i32
    return %arg0, %c0_i32, %c0_i32_0 : i32, i32, i32
  }
  func.func @transform_2(%arg0: i32, %arg1: i32) -> (i32, i32) {
    %c0_i32 = arith.constant 0 : i32
    %c0_i32_0 = arith.constant 0 : i32
    %c0_i32_1 = arith.constant 0 : i32
    return %c0_i32, %c0_i32_0 : i32, i32
  }
  func.func @transform_3(%arg0: i32, %arg1: i32) -> (i32, i32) {
    %c0_i32 = arith.constant 0 : i32
    %c0_i32_0 = arith.constant 0 : i32
    %c0_i32_1 = arith.constant 0 : i32
    return %c0_i32, %c0_i32_0 : i32, i32
  }
  func.func @transform_4(%arg0: i32, %arg1: i32) -> (i32, i32) {
    %c0_i32 = arith.constant 0 : i32
    %c0_i32_0 = arith.constant 0 : i32
    %c0_i32_1 = arith.constant 0 : i32
    return %c0_i32, %c0_i32_0 : i32, i32
  }
  func.func @transform_5(%arg0: i32, %arg1: i32) -> (i32, i32) {
    %c0_i32 = arith.constant 0 : i32
    %c0_i32_0 = arith.constant 0 : i32
    %c0_i32_1 = arith.constant 0 : i32
    return %c0_i32, %c0_i32_0 : i32, i32
  }
  func.func @transform_6(%arg0: i32, %arg1: i32) -> (i32, i32) {
    %c0_i32 = arith.constant 0 : i32
    %c0_i32_0 = arith.constant 0 : i32
    %c0_i32_1 = arith.constant 0 : i32
    return %c0_i32, %c0_i32_0 : i32, i32
  }
  func.func @transform_7(%arg0: i32, %arg1: i32) -> (i32, i32) {
    %c0_i32 = arith.constant 0 : i32
    %c0_i32_0 = arith.constant 0 : i32
    %c0_i32_1 = arith.constant 0 : i32
    return %c0_i32, %c0_i32_0 : i32, i32
  }
  func.func @transform_8(%arg0: i32, %arg1: i32) -> (i32, i32) {
    %c0_i32 = arith.constant 0 : i32
    %c0_i32_0 = arith.constant 0 : i32
    %c0_i32_1 = arith.constant 0 : i32
    return %c0_i32, %c0_i32_0 : i32, i32
  }
  func.func @transform_9(%arg0: i32, %arg1: i32) -> (i32, i32) {
    %c0_i32 = arith.constant 0 : i32
    %c0_i32_0 = arith.constant 0 : i32
    %c0_i32_1 = arith.constant 0 : i32
    return %c0_i32, %c0_i32_0 : i32, i32
  }
  func.func @transform_10(%arg0: i32, %arg1: i32) -> (i32, i32, i32) {
    %c0_i32 = arith.constant 0 : i32
    %c0_i32_0 = arith.constant 0 : i32
    return %arg0, %arg1, %c0_i32 : i32, i32, i32
  }
}

</mosaic_0001>

<bundles_post_ra>
// kernel: tpu_custom_call.1
= control target key start
LH: loop header
LB: loop body
LE: loop exit
PB: predicated region body
PF: predicated region fallthrough
CT: control target
= control target key end

     0   :  { %s1826_s0 = inlined_call_operand.hbm [shape: f32[2,8,32], index: 0, kind: input, shape index: {}]   ;;  %s1827_s1 = inlined_call_operand.hbm [shape: f32[2,8,32], index: 1, kind: input, shape index: {}]   ;;  %s1828_s2 = inlined_call_operand.hbm [shape: f32[32,32], index: 2, kind: input, shape index: {}]   ;;  %s1829_s3 = inlined_call_operand.vmem [shape: f32[1,32], index: 3, kind: input, shape index: {}]   ;;  %s1830_s4 = inlined_call_operand.hbm [shape: f32[32,32], index: 4, kind: input, shape index: {}]   ;;  %s1831_s5 = inlined_call_operand.vmem [shape: f32[1,32], index: 5, kind: input, shape index: {}]   ;;  %s1832_s6 = inlined_call_operand.hbm [shape: f32[32,32], index: 6, kind: input, shape index: {}]   ;;  %s1833_s7 = inlined_call_operand.vmem [shape: f32[1,32], index: 7, kind: input, shape index: {}]   ;;  %s1834_s8 = inlined_call_operand.hbm [shape: f32[32,32], index: 8, kind: input, shape index: {}]   ;;  %s1835_s9 = inlined_call_operand.vmem [shape: f32[1,32], index: 9, kind: input, shape index: {}]   ;;  %s1836_s10 = inlined_call_operand.hbm [shape: f32[2,8,32], index: 10, kind: output, shape index: {}]  }
   0x1   :  { %1842 = sst [smem:[#allocation29_spill]] %s1828_s2 }
   0x2   :  { %1843 = sst [smem:[#allocation30_spill]] %s1830_s4 }
   0x3   :  { %1844 = sst [smem:[#allocation31_spill]] %s1832_s6 }
   0x4   :  { %1845 = sst [smem:[#allocation32_spill]] %s1834_s8 }
   0x5   :  { %1846 = sst [smem:[#allocation33_spill]] %s1835_s9 }
   0x6   :  { %15 = vsyncpa [#allocation6], 0 }
   0x7   :  { %17 = vsyncpa [#allocation6 + $0x1], 0 }
   0x8   :  { %18 = vsyncpa [#allocation9], 0 }
   0x9   :  { %20 = vsyncpa [#allocation9 + $0x1], 0 }
   0xa   :  { %21 = vsyncpa [#allocation12], 0 }
   0xb   :  { %22 = vsyncpa [#allocation15], 0 }
   0xc   :  { %23 = vsyncpa [#allocation7], 0 }
   0xd   :  { %25 = vsyncpa [#allocation7 + $0x1], 0  ;;  %s1591_s13 = smov 0   ;;  %s1593_s14 = smov 0  }
   0xe   :  { %s1595_s15 = smov 0   ;;  %s1597_s16 = smov 0  }
   0xf   :  { %s1599_s17 = smov 0   ;;  %s1601_s18 = smov 0  }
  0x10 LB: > { %1847 = sst [smem:[#allocation23_spill]] %s1502_s13  ;;  %s1622_s19 = sadd.s32 4294967295, %s1522_s18   ;;  %s1522_s18 = sphi %s1601_s18, %s31_s18   ;;  %s1518_s17 = sphi %s1599_s17, %s1869_s17   ;;  %s1514_s16 = sphi %s1597_s16, %s1868_s16   ;;  %s1510_s15 = sphi %s1595_s15, %s1867_s15   ;;  %s1506_s14 = sphi %s1593_s14, %s1871_s14   ;;  %s1502_s13 = sphi %s1591_s13, %s1870_s13  }
  0x11   : > { %1848 = sst [smem:[#allocation24_spill]] %s1510_s15  ;;  %p1070_p0 = scmp.ge.s32.totalorder %s1522_s18, 1 }
  0x12   : > { %1849 = sst [smem:[#allocation25_spill]] %s1518_s17  ;;  %p66_p1 = scmp.eq.s32.totalorder %s1622_s19, 0 }
  0x13   : > { %p298_p2 = scmp.lt.s32.totalorder %s1522_s18, 3  ;;  %s1850_s2 = sld [smem:[#allocation29_spill]] }
  0x14   : > { %s1524_s24 = smov [#allocation10]   ;;  %p1075_p6 = scmp.ge.s32.totalorder %s1522_s18, 2 }
  0x15   : > { %p1630_p3 = pnand %p1070_p0, %p298_p2  ;;  %s311_s25 = sshll.u32 %s1524_s24, 4  ;;  %s312_s25 = int_to_ptr.vmem [resolvable:$true] %s311_s25 }
  0x16   : > { %s1853_s4 = sld [smem:[#allocation30_spill]]  ;;  %s1525_s30 = smov 128  }
  0x17   : > { %p1130_p4 = pneg %p1630_p3  ;;  %s1526_s11 = smov 8  }
  0x18   : > { %s1527_s12 = smov [#allocation11]   ;;  %s1854_s6 = sld [smem:[#allocation31_spill]] }
  0x19   : > { %s309_s22 = sshll.u32 %s1850_s2, 4  ;;  %p1638_p5 = pnand %p1130_p4, %p66_p1  ;;  %s310_s22 = int_to_ptr.hbm [resolvable:$true] %s309_s22 }
  0x1a   : > { %s328_s20 = sshll.u32 %s1527_s12, 4  ;;  %s1855_s8 = sld [smem:[#allocation32_spill]]  ;;  %s329_s20 = int_to_ptr.vmem [resolvable:$true] %s328_s20 }
  0x1b   : > { %1133 = dma.hbm_to_vmem [thread:$0]  (!%p1638_p5), %s310_s22, 512, %s312_s25, [#allocation9], %s1525_s30, %s1525_s30, %s1526_s11  }
  0x1c   : > { %s326_s29 = sshll.u32 %s1853_s4, 4  ;;  %s1528_s25 = smov [#allocation13]   ;;  %s327_s29 = int_to_ptr.hbm [resolvable:$true] %s326_s29 }
  0x1d   : > { %1136 = dma.hbm_to_vmem [thread:$0]  (!%p1638_p5), %s327_s29, 512, %s329_s20, [#allocation12], %s1525_s30, %s1525_s30, %s1526_s11  }
  0x1e   : > { %s343_s2 = sshll.u32 %s1854_s6, 4  ;;  %s345_s4 = sshll.u32 %s1528_s25, 4  ;;  %s344_s2 = int_to_ptr.hbm [resolvable:$true] %s343_s2  ;;  %s346_s4 = int_to_ptr.vmem [resolvable:$true] %s345_s4 }
  0x1f   : > { %1139 = dma.hbm_to_vmem [thread:$0]  (!%p1638_p5), %s344_s2, 512, %s346_s4, [#allocation12], %s1525_s30, %s1525_s30, %s1526_s11  }
  0x20   : > { %s360_s22 = sshll.u32 %s1855_s8, 4  ;;  %s1529_s12 = smov [#allocation14]   ;;  %s361_s22 = int_to_ptr.hbm [resolvable:$true] %s360_s22 }
  0x21   : > { %s362_s21 = sshll.u32 %s1529_s12, 4  ;;  %s1069_s29 = sadd.s32 4294967294, %s1522_s18   ;;  %s363_s21 = int_to_ptr.vmem [resolvable:$true] %s362_s21 }
  0x22   : > { %1142 = dma.hbm_to_vmem [thread:$0]  (!%p1638_p5), %s361_s22, 512, %s363_s21, [#allocation15], %s1525_s30, %s1525_s30, %s1526_s11  }
  0x23   : > { %s43_s20 = sadd.s32 1, %s1518_s17  ;;  %s52_s24 = sadd.s32 1, %s1510_s15 }
  0x24   : > { %p45_p7 = scmp.ge.s32.totalorder %s43_s20, 2  ;;  %p59_p8 = scmp.ne.s32.totalorder %s1510_s15, %s1506_s14 }
  0x25   : > { %p60_p9 = scmp.eq.s32.totalorder %s1522_s18, 0  ;;  %p65_p11 = scmp.ne.s32.totalorder %s1506_s14, %s1502_s13 }
  0x26   : > { %s1873_s20 = smov (%p45_p7, %s43_s20), 0  ;;  %p285_p12 = scmp.eq.s32.totalorder %s1622_s19, 1 }
  0x27   : > { %1856 = sst [smem:[#allocation26_spill]] %s1873_s20  ;;  %p1668_p10 = por %p60_p9, %p59_p8 }
  0x28   : > { %s47_s4 = ssub.s32 %s1518_s17, %s1873_s20  ;;  %p1679_p0 = por %p66_p1, %p65_p11 }
  0x29   : > { %p50_p13 = scmp.eq.s32.totalorder %s47_s4, 0  ;;  %p1683_p2 = por %p285_p12, %p59_p8 }
  0x2a   : > { %p291_p4 = scmp.eq.s32.totalorder %s1069_s29, 1  ;;  %p1158_p7 = scmp.lt.s32.totalorder %s1522_s18, 2 }
  0x2b   : > { %s1688_s11 = scalar_select %p50_p13, %s1510_s15, %s52_s24  }
  0x2c   : > { %p1690_p5 = por %p291_p4, %p65_p11  ;;  %s379_s28 = sand.u32 1, %s1510_s15  }
  0x2d   : > { %1860 = sst [smem:[#allocation27_spill]] %s1688_s11  ;;  %s1077_s22 = sshll.u32 %s1518_s17, 3 }
  0x2e   : > { %s1861_s27 = scalar_select %p1690_p5, 1, 0 }
  0x2f   : > { %s1076_s25 = sshll.u32 %s379_s28, 3  ;;  %s388_s4 = scalar_lea.hbm %s1826_s0, %s1077_s22 }
  0x30   : > { %1862 = sst [smem:[#allocation28_spill]] %s1861_s27  ;;  %s390_s6 = sshll.u32 %s388_s4, 4  ;;  %s391_s6 = int_to_ptr.hbm [resolvable:$true] %s390_s6 }
  0x31   : > { %s383_s8 = scalar_lea.vmem [#allocation5], %s1076_s25  ;;  %p1144_p8 = pnand %p1158_p7, %p1668_p10 }
  0x32   : > { %s392_s20 = sshll.u32 %s383_s8, 4  ;;  %s407_s11 = scalar_lea.hbm %s1827_s1, %s1077_s22  ;;  %s393_s20 = int_to_ptr.vmem [resolvable:$true] %s392_s20 }
  0x33   : > { %s399_s27 = sand.u32 1, %s1522_s18   ;;  %s380_s13 = scalar_lea.sflag [#allocation6], %s379_s28 }
  0x34   : > { %1146 = dma.hbm_to_vmem [thread:$0]  (!%p1144_p8), %s391_s6, 128, %s393_s20, %s380_s13  }
  0x35   : > { %s409_s17 = sshll.u32 %s407_s11, 4  ;;  %s403_s15 = scalar_lea.vmem [#allocation8], %s1076_s25  ;;  %s410_s17 = int_to_ptr.hbm [resolvable:$true] %s409_s17 }
  0x36   : > { %s411_s9 = sshll.u32 %s403_s15, 4  ;;  %s400_s12 = scalar_lea.sflag [#allocation9], %s399_s27  ;;  %s412_s9 = int_to_ptr.vmem [resolvable:$true] %s411_s9 }
  0x37   : > { %1149 = dma.hbm_to_vmem [thread:$0]  (!%p1144_p8), %s410_s17, 128, %s412_s9, %s400_s12  }
  0x38   : > { %420 = sbr.rel (%p1630_p3) target bundleno = 1122 (0x462), region = 60  ;;  %s1709_s8 = sand.u32 (!%p1630_p3), 1, %s1506_s14  }
  0x39   : > { %s1712_s2 = sshll.u32 (!%p1630_p3), %s1709_s8, 3  ;;  %s423_s6 = scalar_lea.sflag (!%p1630_p3), [#allocation6], %s1709_s8 }
  0x3a   : > { %s426_s13 = scalar_lea.vmem (!%p1630_p3), [#allocation5], %s1712_s2 }
  0x3d   : > { %1477 = dma.done.wait (%p1679_p0), %s423_s6, 128  }
  0x3e   : > { %1479 = vsyncadd (%p1679_p0), %s423_s6, 4294967168  ;;  %s432_s9 = sand.u32 1, %s1622_s19   ;;  %s436_s17 = scalar_lea.vmem [#allocation8], %s1712_s2 }
  0x3f   : > { %s433_s15 = scalar_lea.sflag [#allocation9], %s432_s9 }
  0x40   : > { %1481 = dma.done.wait (%p1679_p0), %s433_s15, 128  }
  0x41   : > { %1483 = vsyncadd (%p1679_p0), %s433_s15, 4294967168 }
  0x42   : > { %1485 = dma.done.wait (%p66_p1), [#allocation9], 512  }
  0x43   : > { %1487 = vsyncadd (%p66_p1), [#allocation9], 4294966784 }
  0x44   : > { %1489 = dma.done.wait (%p66_p1), [#allocation12], 1024  }
  0x45   : > { %1491 = vsyncadd (%p66_p1), [#allocation12], 4294966272 }
  0x46   : > { %1493 = dma.done.wait (%p66_p1), [#allocation15], 512  }
  0x47   : > { %1495 = vsyncadd (%p66_p1), [#allocation15], 4294966784  ;;  %v507_v0 = vld [vmem:[#allocation11 + $0x18] sm:$0xff]  ;;  %v506_v1 = vld [vmem:[#allocation11 + $0x10] sm:$0xff]  ;;  %vm512_vm0 = vcmask 261120   ;;  %vm601_vm1 = vcmask 64512  }
  0x48   : > { %528 = vmatpush.msra.mxu0 %v507_v0  ;;  %v570_v2 = vld [vmem:[#allocation10 + $0x18] sm:$0xff]  ;;  %v505_v3 = vld [vmem:[#allocation11 + $0x8] sm:$0xff]  ;;  %v569_v4 = vld [vmem:[#allocation10 + $0x10] sm:$0xff]  ;;  %s1530_s11 = smov 104   ;;  %s1531_s27 = smov 120   ;;  %vm733_vm2 = vcmask 130112  }
  0x49   : > { %591 = vmatpush.msra.mxu2 %v570_v2  ;;  %v504_v5 = vld [vmem:[#allocation11] sm:$0xff]  ;;  %v568_v6 = vld [vmem:[#allocation10 + $0x8] sm:$0xff]  ;;  %v503_v7 = vld [vmem:[%s436_s17] sm:$0xff]  ;;  %s1532_s28 = smov 112   ;;  %s1533_s21 = smov 16   ;;  %vm804_vm3 = vcmask 195712  }
  0x4a   : > { %529 = vmatpush.msra.mxu0 %v506_v1  ;;  %v567_v8 = vld [vmem:[#allocation10] sm:$0xff]  ;;  %v1224_v10 = vld [vmem:[%s1831_s5] ss:$0 sm:$0xff]  ;;  %v540_v17 = vld [vmem:[#allocation13 + $0x18] sm:$0xff]  ;;  %s1534_s4 = smov 8   ;;  %s1535_s29 = smov 24  }
  0x4b   : > { %592 = vmatpush.msra.mxu2 %v569_v4  ;;  %v566_v9 = vld [vmem:[%s426_s13] sm:$0xff]  ;;  %v539_v18 = vld [vmem:[#allocation13 + $0x10] sm:$0xff]  ;;  %557 = vmatpush.msra.mxu1 %v540_v17  ;;  %vm875_vm4 = vcmask 261312   ;;  %s1105_s24 = sshll.u32 %s1514_s16, 3  ;;  %s1863_s17 = sld [smem:[#allocation33_spill]] }
  0x4c   : > { %530 = vmatpush.msra.mxu0 %v505_v3  ;;  %v1225_v13 = vld [vmem:[%s1829_s3] ss:$0 sm:$0xff]  ;;  %v537_v28 = vld [vmem:[#allocation13] sm:$0xff]  ;;  %s922_s13 = scalar_lea.hbm %s1836_s10, %s1105_s24  ;;  %s498_s19 = scalar_lea.vmem [#allocation16], %s1712_s2 }
  0x4d   : > { %593 = vmatpush.msra.mxu2 %v568_v6  ;;  %558 = vmatpush.msra.mxu1 %v539_v18  ;;  %v538_v27 = vld [vmem:[#allocation13 + $0x8] sm:$0xff]  ;;  %v878_v17 = vld [vmem:[#allocation14] sm:$0xff]  ;;  %s924_s23 = sshll.u32 %s498_s19, 4  ;;  %s926_s20 = sshll.u32 %s922_s13, 4  ;;  %s925_s23 = int_to_ptr.vmem [resolvable:$true] %s924_s23  ;;  %s927_s20 = int_to_ptr.hbm [resolvable:$true] %s926_s20 }
  0x4e   : > { %531 = vmatpush.msra.mxu0 %v504_v5  ;;  %v1226_v40 = vld [vmem:[%s1833_s7] ss:$0 sm:$0xff]  ;;  %s911_s26 = scalar_lea.sflag [#allocation7], %s1709_s8  ;;  %s1438_s16 = sshra.s32 %s927_s20, 4  ;;  %s1439_s16 = int_to_ptr.hbm [resolvable:$true] %s1438_s16 }
  0x4f   : > { %1088 = vmatmul.msk.f32.vlgmr.msra.gmra.mxu0 %vm512_vm0, %v503_v7  ;;  %594 = vmatpush.msra.mxu2 %v567_v8  ;;  %s1444_s2 = scalar_lea.hbm %s1836_s10, 16  ;;  %p1445_p10 = scmp.lt.s32.totalorder %s1439_s16, %s1836_s10 }
  0x50   : > { %1090 = vmatmul.msk.f32.vlgmr.msra.gmra.mxu2 %vm512_vm0, %v566_v9  ;;  %559 = vmatpush.msra.mxu1 %v538_v27 }
  0x52   : > { %560 = vmatpush.msra.mxu1 %v537_v28 }
  0x53   : > { %1089 = vmatmul.msk.f32.vlgmr.msra.gmra.mxu1 %vm512_vm0, %v503_v7 }
  0xcc   : > { %v533_v11 = vpop.f32.mrf.mxu0 }
  0xcd   : > { %v534_v12 = vadd.f32 %v1224_v10, %v533_v11 }
  0xcf   : > { %536 = vst.msk [vmem:[#allocation2] sm:$0xff] %vm512_vm0, %v534_v12 }
  0xd0   : > { %v562_v41 = vpop.f32.mrf.mxu1 }
  0xd1   : > { %v563_v42 = vadd.f32 %v1226_v40, %v562_v41 }
  0xd3   : > { %v596_v14 = vpop.f32.mrf.mxu2  ;;  %565 = vst.msk [vmem:[#allocation3] sm:$0xff] %vm512_vm0, %v563_v42 }
  0xd4   : > { %v597_v16 = vadd.f32 %v1225_v13, %v596_v14  ;;  %v881_v14 = vld [vmem:[#allocation14 + $0x18] sm:$0xff] }
  0xd6   : > { %v599_v15 = vld [vmem:[#allocation2] sm:$0xff] }
  0xd7   : > { %808 = vrot.lane.b32.xlu2 %v599_v15, %s1530_s11  ;;  %665 = vrot.lane.b32.xlu1 %v599_v15, %s1531_s27 }
  0xd8   : > { %737 = vrot.lane.b32.xlu0 %v599_v15, %s1532_s28  ;;  %1091 = vmatpush.xpose.msk.msra.mxu3 %vm601_vm1, %v599_v15  ;;  %v880_v15 = vld [vmem:[#allocation14 + $0x10] sm:$0xff] }
  0xda   : > { %v600_v43 = vld [vmem:[#allocation3] sm:$0xff] }
  0xdb   : > { %1092 = vmatmul.msk.f32.vlgmr.msra.gmra.mxu3 %vm601_vm1, %v597_v16 }
  0xdc   : > { %657 = vmatpush.msrb.mxu3 %v600_v43 }
  0xdf   : > { %806 = vrot.lane.b32.xlu2 %v597_v16, %s1530_s11  ;;  %663 = vrot.lane.b32.xlu1 %v597_v16, %s1531_s27 }
  0xe0   : > { %735 = vrot.lane.b32.xlu0 %v597_v16, %s1532_s28  ;;  %v879_v16 = vld [vmem:[#allocation14 + $0x8] sm:$0xff] }
 0x131   : > { %v809_v20 = vpop.permute.xlu2 %808 }
 0x139   : > { %v807_v24 = vpop.permute.xlu2 %806 }
 0x149   : > { %v666_v19 = vpop.permute.xlu1 %665 }
 0x14a   : > { %v738_v21 = vpop.permute.xlu0 %737  ;;  %1094 = vmatpush.xpose.msk.msrb.mxu0 %vm601_vm1, %v666_v19 }
 0x14b   : > { %1097 = vmatpush.xpose.msk.msrb.mxu2 %vm601_vm1, %v738_v21 }
 0x14e   : > { %1100 = vmatpush.xpose.msk.msra.mxu0 %vm601_vm1, %v809_v20 }
 0x14f   : > { %901 = vmatpush.msra.mxu2 %v881_v14 }
 0x151   : > { %v664_v22 = vpop.permute.xlu1 %663  ;;  %902 = vmatpush.msra.mxu2 %v880_v15 }
 0x152   : > { %v736_v23 = vpop.permute.xlu0 %735  ;;  %1095 = vmatmul.msk.f32.vlgmr.msrb.gmra.mxu0 %vm601_vm1, %v664_v22  ;;  %v1227_v22 = vld [vmem:[%s1863_s17] ss:$0 sm:$0xff] }
 0x153   : > { %1098 = vmatmul.msk.f32.vlgmr.msrb.gmra.mxu2 %vm601_vm1, %v736_v23 }
 0x154   : > { %903 = vmatpush.msra.mxu2 %v879_v16 }
 0x156   : > { %904 = vmatpush.msra.mxu2 %v878_v17 }
 0x15a   : > { %1101 = vmatmul.msk.f32.vlgmr.msra.gmra.mxu0 %vm601_vm1, %v807_v24 }
 0x15e   : > { %v625_v25 = vpop.f32.mrf.mxu3 }
 0x15f   : > { %v628_v26 = vsel %vm601_vm1, %v625_v25, -inf }
 0x160   : > { %629 = vmax.xlane.f32.xlu0 %v628_v26 }
 0x1cf   : > { %v688_v29 = vpop.f32.mrf.mxu0 }
 0x1d0   : > { %v691_v30 = vsel %vm601_vm1, %v688_v29, -inf }
 0x1d1   : > { %692 = vmax.xlane.f32.xlu1 %v691_v30 }
 0x1d3   : > { %v630_v31 = vpop.xlane.xlu0 %629 }
 0x1d4   : > { %v631_v32 = vsub.f32 %v625_v25, %v630_v31 }
 0x1d6   : > { %v632_v33 = vmul.f32 1.442695, %v631_v32  ;;  %v760_v34 = vpop.f32.mrf.mxu2 }
 0x1d7   : > { %v763_v35 = vsel %vm601_vm1, %v760_v34, -inf  ;;  %v831_v36 = vpop.f32.mrf.mxu0 }
 0x1d8   : > { %1228 = vpow2.f32 %v632_v33  ;;  %764 = vmax.xlane.f32.xlu2 %v763_v35  ;;  %v834_v38 = vsel %vm601_vm1, %v831_v36, -inf }
 0x1de   : > { %v1229_v37 = vpop.eup %1228 }
 0x1df   : > { %v634_v39 = vsel %vm601_vm1, %v1229_v37, 0.0 }
 0x1e0   : > { %835 = vmax.xlane.f32.xlu2 %v834_v38  ;;  %635 = vadd.xlane.f32.xlu0 %v634_v39 }
 0x244   : > { %v693_v44 = vpop.xlane.xlu1 %692 }
 0x245   : > { %v694_v45 = vsub.f32 %v688_v29, %v693_v44 }
 0x247   : > { %v695_v46 = vmul.f32 1.442695, %v694_v45 }
 0x249   : > { %1230 = vpow2.f32 %v695_v46 }
 0x24b   : > { %v765_v47 = vpop.xlane.xlu2 %764 }
 0x24c   : > { %v766_v48 = vsub.f32 %v760_v34, %v765_v47 }
 0x24e   : > { %v767_v49 = vmul.f32 1.442695, %v766_v48 }
 0x24f   : > { %v1231_v50 = vpop.eup %1230 }
 0x250   : > { %1232 = vpow2.f32 %v767_v49  ;;  %v697_v51 = vsel %vm601_vm1, %v1231_v50, 0.0 }
 0x251   : > { %698 = vadd.xlane.f32.xlu1 %v697_v51 }
 0x253   : > { %v836_v52 = vpop.xlane.xlu2 %835  ;;  %v636_v53 = vpop.xlane.xlu0 %635 }
 0x254   : > { %v837_v54 = vsub.f32 %v831_v36, %v836_v52  ;;  %1234 = vrcp.f32 %v636_v53 }
 0x256   : > { %v1233_v55 = vpop.eup %1232  ;;  %v838_v56 = vmul.f32 1.442695, %v837_v54 }
 0x257   : > { %v769_v57 = vsel %vm601_vm1, %v1233_v55, 0.0 }
 0x258   : > { %1236 = vpow2.f32 %v838_v56  ;;  %770 = vadd.xlane.f32.xlu2 %v769_v57 }
 0x25a   : > { %v1235_v58 = vpop.eup %1234 }
 0x25b   : > { %v638_v59 = vmul.f32 %v1235_v58, %v1229_v37 }
 0x25d   : > { %1093 = vmatmul.msk.f32.vlgmr.msrb.gmra.mxu3 %vm601_vm1, %v638_v59 }
 0x25e   : > { %v1237_v60 = vpop.eup %1236 }
 0x25f   : > { %v840_v61 = vsel %vm601_vm1, %v1237_v60, 0.0 }
 0x260   : > { %841 = vadd.xlane.f32.xlu0 %v840_v61 }
 0x26a   : > { %703 = vrot.lane.b32.xlu1 %v600_v43, %s1531_s27 }
 0x270   : > { %774 = vrot.lane.b32.xlu2 %v600_v43, %s1532_s28 }
 0x274   : > { %845 = vrot.lane.b32.xlu0 %v600_v43, %s1530_s11  ;;  %s1440_s11 = scalar_lea.hbm %s1439_s16, 8 }
 0x275   : > { %p1441_p1 = scmp.ne.s32.totalorder %s1439_s16, %s1440_s11  ;;  %p1446_p11 = scmp.lt.s32.totalorder %s1444_s2, %s1440_s11 }
 0x277   : > { %p1442_p3 = pnand %p1441_p1, %p1683_p2  ;;  %p1447_p12 = por %p1446_p11, %p1445_p10 }
 0x279   : > { %p1443_p9 = pneg %p1442_p3 }
 0x27b   : > { %p1448_p13 = pnand %p1447_p12, %p1443_p9 }
 0x2c4   : > { %v699_v63 = vpop.xlane.xlu1 %698 }
 0x2cb   : > { %v771_v62 = vpop.xlane.xlu2 %770 }
 0x2cc   : > { %1238 = vrcp.f32 %v771_v62 }
 0x2cd   : > { %1240 = vrcp.f32 %v699_v63 }
 0x2d2   : > { %v1239_v0 = vpop.eup %1238 }
 0x2d3   : > { %v773_v1 = vmul.f32 %v1239_v0, %v1233_v55  ;;  %v775_v2 = vpop.permute.xlu2 %774  ;;  %v1241_v3 = vpop.eup %1240 }
 0x2d4   : > { %795 = vmatpush.msra.mxu3 %v775_v2  ;;  %v842_v4 = vpop.xlane.xlu0 %841  ;;  %v701_v6 = vmul.f32 %v1241_v3, %v1231_v50 }
 0x2d5   : > { %1099 = vmatmul.msk.f32.vlgmr.msra.gmra.mxu3 %vm601_vm1, %v773_v1  ;;  %1242 = vrcp.f32 %v842_v4 }
 0x2db   : > { %v1243_v8 = vpop.eup %1242 }
 0x2dc   : > { %v704_v5 = vpop.permute.xlu1 %703  ;;  %v844_v9 = vmul.f32 %v1243_v8, %v1237_v60 }
 0x2dd   : > { %724 = vmatpush.msrb.mxu1 %v704_v5 }
 0x2de   : > { %1096 = vmatmul.msk.f32.vlgmr.msrb.gmra.mxu1 %vm601_vm1, %v701_v6 }
 0x2e0   : > { %v659_v7 = vpop.f32.mrf.mxu3 }
 0x2e1   : > { %662 = vst.msk [vmem:[#allocation4] sm:$0xff] %vm601_vm1, %v659_v7 }
 0x2e6   : > { %v846_v10 = vpop.permute.xlu0 %845 }
 0x2e7   : > { %866 = vmatpush.msra.mxu1 %v846_v10 }
 0x2e8   : > { %1102 = vmatmul.msk.f32.vlgmr.msra.gmra.mxu1 %vm601_vm1, %v844_v9 }
 0x358   : > { %v797_v11 = vpop.f32.mrf.mxu3 }
 0x359   : > { %801 = vrot.lane.b32.xlu0 %v797_v11, %s1533_s21 }
 0x35b   : > { %v726_v12 = vpop.f32.mrf.mxu1 }
 0x35c   : > { %730 = vrot.lane.b32.xlu1 %v726_v12, %s1534_s4 }
 0x365   : > { %v868_v13 = vpop.f32.mrf.mxu1 }
 0x366   : > { %872 = vrot.lane.b32.xlu2 %v868_v13, %s1535_s29 }
 0x3c0   : > { %v873_v20 = vpop.permute.xlu2 %872 }
 0x3cb   : > { %v802_v19 = vpop.permute.xlu0 %801 }
 0x3ce   : > { %v731_v18 = vpop.permute.xlu1 %730 }
 0x3cf   : > { %734 = vst.msk [vmem:[#allocation4] sm:$0xff] %vm733_vm2, %v731_v18 }
 0x3d0   : > { %805 = vst.msk [vmem:[#allocation4] sm:$0xff] %vm804_vm3, %v802_v19 }
 0x3d1   : > { %876 = vst.msk [vmem:[#allocation4] sm:$0xff] %vm875_vm4, %v873_v20 }
 0x3d8   : > { %v877_v21 = vld [vmem:[#allocation4] sm:$0xff] }
 0x3d9   : > { %1103 = vmatmul.msk.f32.vlgmr.msra.gmra.mxu2 %vm512_vm0, %v877_v21 }
 0x45c   : > { %v906_v23 = vpop.f32.mrf.mxu2 }
 0x45d   : > { %v907_v24 = vadd.f32 %v1227_v22, %v906_v23 }
 0x45f   : > { %909 = vst.msk [vmem:[%s498_s19] sm:$0xff] %vm512_vm0, %v907_v24 }
 0x460   : > { %1451 = shalt.err (!%p1448_p13)
}
 0x461   : > { %1128 = dma.vmem_to_hbm [thread:$0]  (%p1683_p2), %s925_s23, 128, %s927_s20, %s911_s26  }
 0x462 PF: > { %s1864_s8 = sld [smem:[#allocation23_spill]]  ;;  %p1151_p0 = pnand %p1075_p6, %p1690_p5 }
 0x464   : > { %p1152_p4 = pneg %p1151_p0 }
 0x468   : > { %s938_s4 = sand.u32 1, %s1864_s8  }
 0x469   : > { %s939_s29 = scalar_lea.sflag [#allocation7], %s938_s4 }
 0x46a   : > { %1497 = dma.done.wait (%p1152_p4), %s939_s29, 128  }
 0x46b   : > { %1499 = vsyncadd (%p1152_p4), %s939_s29, 4294967168  ;;  %s31_s18 = sadd.s32 1, %s1522_s18   ;;  %s1866_s24 = sld [smem:[#allocation24_spill]] }
 0x46c   : > { %p28_p7 = scmp.ge.s32.totalorder %s31_s18, 4   ;;  %s1867_s15 = sld [smem:[#allocation27_spill]] }
 0x46d   : > { %s1868_s16 = sld [smem:[#allocation25_spill]]  ;;  %s1870_s13 = smov %s1506_s14 }
 0x46e   : > { %s1869_s17 = sld [smem:[#allocation26_spill]]  ;;  %30 = sbr.rel (!%p28_p7) target bundleno = 16 (0x10), region = 138 }
 0x471   : > { %s1871_s14 = smov %s1866_s24 }
 0x473   :  { %945 = vsyncpa [#allocation6], 1 }
 0x474   :  { %947 = vsyncpa [#allocation6 + $0x1], 1 }
 0x475   :  { %948 = vsyncpa [#allocation9], 1 }
 0x476   :  { %950 = vsyncpa [#allocation9 + $0x1], 1 }
 0x477   :  { %951 = vsyncpa [#allocation12], 1 }
 0x478   :  { %952 = vsyncpa [#allocation15], 1 }
 0x479   :  { %953 = vsyncpa [#allocation7], 1 }
 0x47a   :  { %955 = vsyncpa [#allocation7 + $0x1], 1 }

</bundles_post_ra>
